<compile_context>
chip_gen: v7x
topology: tpu7x:2x2x1
jax: 0.10.0
libtpu: 0.0.40
codegen_flags: <defaults>
</compile_context>

<pallas_src>
from typing import NamedTuple

import jax
import jax.numpy as jnp
from jax.experimental import pallas as pl
from jax.experimental.pallas import tpu as pltpu


_VMEM_BUDGET = 40 * 1024 * 1024  # double-buffered budget; fits v7x 64 MiB VMEM


def _round_up(x, m):
    return (x + m - 1) // m * m


def _largest_divisor_tile(total, unit, cap):
    """Largest t = unit*d with d | (total // unit) and t <= cap (t >= unit)."""
    q = total // unit
    best = unit
    for d in range(1, q + 1):
        if q % d == 0 and unit * d <= cap:
            best = unit * d
    return best


def _footprint(tb, tk, tn, x_it, w_it, out_it):
    """Conservative double-buffered VMEM footprint of one grid step (bytes)."""
    return (2 * (tb * tk * x_it + tk * tn * w_it + 8 * tn * 4 + tb * tn * out_it)
            + tb * tn * 4)  # + f32 accumulator (worst case)


class ConcatSquashParams(NamedTuple):
    w: jax.Array        # (k_pad, n_pad) pre-transposed, padded, matmul dtype
    p: jax.Array        # (8, n_pad) f32 rows [b_layer, w_gate, b_gate, w_hyper, 0..]
    dim_in: int
    dim_out: int


def prepare_params(w_layer, b_layer, w_gate, b_gate, w_hyper, *,
                   matmul_dtype=jnp.bfloat16):
    """One-time parameter prep (out of the per-call hot path).

    w_layer: (dim_out, dim_in) PyTorch nn.Linear layout.
    Pads lane dims to multiples of 128, transposes the layer weight, packs the
    four per-feature vectors into one lane-dense (8, n_pad) slab and casts the
    matmul operand to `matmul_dtype` (None -> keep f32).
    """
    dim_out, dim_in = w_layer.shape
    k_pad = _round_up(dim_in, 128)
    n_pad = _round_up(dim_out, 128)

    w_t = jnp.transpose(jnp.asarray(w_layer, jnp.float32))          # (dim_in, dim_out)
    w_t = jnp.pad(w_t, ((0, k_pad - dim_in), (0, n_pad - dim_out)))  # zero-pad K & N
    if matmul_dtype is not None:
        w_t = w_t.astype(matmul_dtype)

    params = jnp.stack(
        [
            jnp.reshape(jnp.asarray(b_layer, jnp.float32), (dim_out,)),
            jnp.reshape(jnp.asarray(w_gate, jnp.float32), (dim_out,)),
            jnp.reshape(jnp.asarray(b_gate, jnp.float32), (dim_out,)),
            jnp.reshape(jnp.asarray(w_hyper, jnp.float32), (dim_out,)),
        ],
        axis=0,
    )
    params = jnp.pad(params, ((0, 4), (0, n_pad - dim_out)))         # (8, n_pad)
    return ConcatSquashParams(w=w_t, p=params, dim_in=dim_in, dim_out=dim_out)


def _make_fused_kernel(cast_dtype):
    """grid = (M/TB, N/TN); full K resident -> no accumulator scratch."""
    def kernel(t_ref, x_ref, w_ref, p_ref, o_ref):
        x = x_ref[...]
        if cast_dtype is not None:
            x = x.astype(cast_dtype)
        acc = jnp.dot(x, w_ref[...], preferred_element_type=jnp.float32)
        t = t_ref[0, 0]
        b_row = p_ref[0:1, :]
        gw_row = p_ref[1:2, :]
        gb_row = p_ref[2:3, :]
        hw_row = p_ref[3:4, :]
        gate = jax.nn.sigmoid(t * gw_row + gb_row)    # EUP sigmoid, (1, TN)
        o_ref[...] = ((acc + b_row) * gate + t * hw_row).astype(o_ref.dtype)
    return kernel


def _make_acc_kernel(cast_dtype):
    """grid = (M/TB, N/TN, K/TK); K is the (arbitrary) reduction axis."""
    def kernel(t_ref, x_ref, w_ref, p_ref, o_ref, acc_ref):
        k = pl.program_id(2)

        @pl.when(k == 0)
        def _init():
            acc_ref[...] = jnp.zeros_like(acc_ref)

        x = x_ref[...]
        if cast_dtype is not None:
            x = x.astype(cast_dtype)
        acc_ref[...] += jnp.dot(x, w_ref[...], preferred_element_type=jnp.float32)

        @pl.when(k == pl.num_programs(2) - 1)
        def _finalize():
            t = t_ref[0, 0]
            b_row = p_ref[0:1, :]
            gw_row = p_ref[1:2, :]
            gb_row = p_ref[2:3, :]
            hw_row = p_ref[3:4, :]
            gate = jax.nn.sigmoid(t * gw_row + gb_row)
            o_ref[...] = ((acc_ref[...] + b_row) * gate + t * hw_row).astype(o_ref.dtype)
    return kernel


def _choose_tiles(m_pad0, k_pad, n_pad, x_it, w_it, out_it, sub, tb, tn, tk):
    if tn is None:
        tn = n_pad            # full-N resident by default
    if tk is None:
        tk = k_pad            # full-K resident by default -> fused kernel
    if tb is None:
        tb = min(_round_up(512, sub), _round_up(m_pad0, sub))
        # Keep >= 2 parallel grid steps so a 2-TensorCore chip (v7x) can shard.
        if tn == n_pad and tk == k_pad and m_pad0 >= 2 * sub and tb >= m_pad0:
            tb = _round_up(-(-m_pad0 // 2), sub)
        # Shrink to the VMEM budget: batch tile first, then K, then N.
        while _footprint(tb, tk, tn, x_it, w_it, out_it) > _VMEM_BUDGET and tb > sub:
            tb = max(sub, _round_up(tb // 2, sub))
        while _footprint(tb, tk, tn, x_it, w_it, out_it) > _VMEM_BUDGET and tk > 128:
            tk = _largest_divisor_tile(k_pad, 128, max(128, tk // 2))
        while _footprint(tb, tk, tn, x_it, w_it, out_it) > _VMEM_BUDGET and tn > 128:
            tn = _largest_divisor_tile(n_pad, 128, max(128, tn // 2))
    assert tb > 0 and tb % sub == 0, (tb, sub)
    assert tn % 128 == 0 and n_pad % tn == 0, (tn, n_pad)
    assert tk % 128 == 0 and k_pad % tk == 0, (tk, k_pad)
    return tb, tn, tk


def concat_squash_linear(t, x, prepared: ConcatSquashParams, *,
                         tb=None, tn=None, tk=None):
    """ConcatSquashLinear forward via Pallas.

    t        : scalar
    x        : (batch, dim_in)
    prepared : output of prepare_params()
    returns  : (batch, dim_out) in x.dtype
    """
    batch, dim_in = x.shape
    assert dim_in == prepared.dim_in, (dim_in, prepared.dim_in)
    w, p = prepared.w, prepared.p
    k_pad, n_pad = w.shape
    out_dtype = x.dtype

    w_it = jnp.dtype(w.dtype).itemsize
    x_it = jnp.dtype(x.dtype).itemsize
    out_it = jnp.dtype(out_dtype).itemsize
    # Sublane multiple follows the matmul operand packing (f32->8, bf16->16).
    sub = 8 * max(1, 4 // w_it)
    m_pad0 = _round_up(batch, sub)

    tb, tn, tk = _choose_tiles(m_pad0, k_pad, n_pad, x_it, w_it, out_it, sub,
                               tb, tn, tk)
    m_pad = _round_up(m_pad0, tb)
    grid_m, grid_n, grid_k = m_pad // tb, n_pad // tn, k_pad // tk

    # Only x is padded per call; zero-padding of K is required for a correct
    # reduction (weights were zero-padded once in prepare_params).
    x_p = x
    if (m_pad, k_pad) != (batch, dim_in):
        x_p = jnp.pad(x, ((0, m_pad - batch), (0, k_pad - dim_in)))
    # Pre-cast x only when a batch tile is revisited across N tiles; for the
    # common grid_n == 1 case cast in-register inside the kernel instead.
    if w.dtype != x_p.dtype and grid_n >= 2:
        x_p = x_p.astype(w.dtype)
    cast_dtype = w.dtype if x_p.dtype != w.dtype else None
    x_it = jnp.dtype(x_p.dtype).itemsize

    t_arr = jnp.asarray(t, jnp.float32).reshape(1, 1)

    footprint = _footprint(tb, tk, tn, x_it, w_it, out_it)
    vmem_limit = None
    if footprint > 12 * 1024 * 1024:   # exceed v5e's 16 MiB scoped default soon
        vmem_limit = min(int(footprint * 1.25) + (2 << 20), 48 * 1024 * 1024)

    cost = pl.CostEstimate(
        flops=2 * m_pad * k_pad * n_pad,
        transcendentals=grid_m * n_pad,
        bytes_accessed=(m_pad * k_pad * x_it * (grid_n if grid_k > 1 else 1)
                        + k_pad * n_pad * w_it * (grid_m if grid_n * grid_k > 1 else 1)
                        + m_pad * n_pad * out_it
                        + 8 * n_pad * 4),
    )

    if grid_k == 1:
        # Fused path: full K resident, no accumulator scratch.
        out_p = pl.pallas_call(
            _make_fused_kernel(cast_dtype),
            out_shape=jax.ShapeDtypeStruct((m_pad, n_pad), out_dtype),
            grid_spec=pltpu.PrefetchScalarGridSpec(
                num_scalar_prefetch=0,
                grid=(grid_m, grid_n),
                in_specs=[
                    pl.BlockSpec((1, 1), lambda i, j: (0, 0),
                                 memory_space=pltpu.MemorySpace.SMEM),
                    pl.BlockSpec((tb, k_pad), lambda i, j: (i, 0)),   # x tile
                    pl.BlockSpec((k_pad, tn), lambda i, j: (0, j)),   # resident W
                    pl.BlockSpec((8, tn), lambda i, j: (0, j)),       # packed rows
                ],
                out_specs=pl.BlockSpec((tb, tn), lambda i, j: (i, j)),
            ),
            compiler_params=pltpu.CompilerParams(
                dimension_semantics=("parallel", "parallel"),
                vmem_limit_bytes=vmem_limit,
            ),
            cost_estimate=cost,
        )(t_arr, x_p, w, p)
    else:
        # Multi-K fallback: resident f32 accumulator, K last / arbitrary.
        out_p = pl.pallas_call(
            _make_acc_kernel(cast_dtype),
            out_shape=jax.ShapeDtypeStruct((m_pad, n_pad), out_dtype),
            grid_spec=pltpu.PrefetchScalarGridSpec(
                num_scalar_prefetch=0,
                grid=(grid_m, grid_n, grid_k),
                in_specs=[
                    pl.BlockSpec((1, 1), lambda i, j, k: (0, 0),
                                 memory_space=pltpu.MemorySpace.SMEM),
                    pl.BlockSpec((tb, tk), lambda i, j, k: (i, k)),   # x tile
                    pl.BlockSpec((tk, tn), lambda i, j, k: (k, j)),   # w tile
                    pl.BlockSpec((8, tn), lambda i, j, k: (0, j)),    # packed rows
                ],
                out_specs=pl.BlockSpec((tb, tn), lambda i, j, k: (i, j)),
                scratch_shapes=[pltpu.VMEM((tb, tn), jnp.float32)],
            ),
            compiler_params=pltpu.CompilerParams(
                dimension_semantics=("parallel", "parallel", "arbitrary"),
                vmem_limit_bytes=vmem_limit,
            ),
            cost_estimate=cost,
        )(t_arr, x_p, w, p)

    return out_p[:batch, :prepared.dim_out]


def _reference(t, x, w_layer, b_layer, w_gate, b_gate, w_hyper):
    t2 = jnp.asarray(t, jnp.float32).reshape(1, 1)
    lin = x @ w_layer.T + b_layer
    gate = jax.nn.sigmoid(t2 @ w_gate.T + b_gate)
    hyper = t2 @ w_hyper.T
    return lin * gate + hyper


if __name__ == "__main__":
    key = jax.random.PRNGKey(0)
    k_x, k_w, k_b, k_gw, k_gb, k_hw, k_x2, k_w2 = jax.random.split(key, 8)

    # ---- small config (matches the toy module shapes) ----
    batch, dim_in, dim_out = 8, 32, 64
    x = jax.random.normal(k_x, (batch, dim_in), jnp.float32)
    t = jnp.float32(0.37)

    w_layer = jax.random.normal(k_w, (dim_out, dim_in), jnp.float32) * 0.1
    b_layer = jax.random.normal(k_b, (dim_out,), jnp.float32) * 0.1
    w_gate = jax.random.normal(k_gw, (dim_out, 1), jnp.float32) * 0.1
    b_gate = jax.random.normal(k_gb, (dim_out,), jnp.float32) * 0.1
    w_hyper = jax.random.normal(k_hw, (dim_out, 1), jnp.float32) * 0.1
    ref = _reference(t, x, w_layer, b_layer, w_gate, b_gate, w_hyper)

    # default (bf16 matmul operands, f32 accumulation) — fused resident-weight path
    params_bf16 = prepare_params(w_layer, b_layer, w_gate, b_gate, w_hyper)
    out_bf16 = jax.block_until_ready(concat_squash_linear(t, x, params_bf16))
    assert out_bf16.shape == (batch, dim_out)
    assert jnp.allclose(out_bf16, ref, atol=3e-2, rtol=3e-2)

    # f32 operand path (matmul_dtype=None)
    params_f32 = prepare_params(w_layer, b_layer, w_gate, b_gate, w_hyper,
                                matmul_dtype=None)
    out_f32 = jax.block_until_ready(concat_squash_linear(t, x, params_f32))
    assert jnp.allclose(out_f32, ref, atol=2e-3, rtol=2e-3)

    # ---- medium config: fused path with grid_m = 2 (batch split) ----
    b2, k2, n2 = 256, 384, 256
    x2 = jax.random.normal(k_x2, (b2, k2), jnp.float32)
    w2 = jax.random.normal(k_w2, (n2, k2), jnp.float32) * 0.05
    b2l = jax.random.normal(k_b, (n2,), jnp.float32) * 0.1
    g2w = jax.random.normal(k_gw, (n2, 1), jnp.float32) * 0.1
    g2b = jax.random.normal(k_gb, (n2,), jnp.float32) * 0.1
    h2w = jax.random.normal(k_hw, (n2, 1), jnp.float32) * 0.1
    ref2 = _reference(t, x2, w2, b2l, g2w, g2b, h2w)

    p2 = prepare_params(w2, b2l, g2w, g2b, h2w)
    out2 = jax.block_until_ready(concat_squash_linear(t, x2, p2))
    assert out2.shape == (b2, n2)
    assert jnp.allclose(out2, ref2, atol=5e-2, rtol=5e-2)

    # ---- medium config: multi-K accumulator fallback (explicit 2x2x3 grid) ----
    out3 = jax.block_until_ready(
        concat_squash_linear(t, x2, p2, tb=128, tn=128, tk=128))
    assert out3.shape == (b2, n2)
    assert jnp.allclose(out3, ref2, atol=5e-2, rtol=5e-2)

    print("KERNEL_OK")
</pallas_src>

<mosaic_0001>
module attributes {stable_mosaic.version = 11 : i64} {
  func.func @kernel(%arg0: i32, %arg1: i32, %arg2: memref<1x1xf32, #tpu.memory_space<smem>>, %arg3: memref<16x128xf32, #tpu.memory_space<vmem>>, %arg4: memref<128x128xbf16, #tpu.memory_space<vmem>>, %arg5: memref<8x128xf32, #tpu.memory_space<vmem>>, %arg6: memref<16x128xf32, #tpu.memory_space<vmem>>) attributes {dimension_semantics = [#tpu.dimension_semantics<parallel>, #tpu.dimension_semantics<parallel>], iteration_bounds = array<i64: 1, 1>, scalar_prefetch = 0 : i64, scratch_operands = 0 : i64, tpu.core_type = #tpu.core_type<tc>, window_params = [{transform_indices = @transform_0, window_bounds = array<i64: 1, 1>}, {transform_indices = @transform_1, window_bounds = array<i64: 16, 128>}, {transform_indices = @transform_2, window_bounds = array<i64: 128, 128>}, {transform_indices = @transform_3, window_bounds = array<i64: 8, 128>}, {transform_indices = @transform_4, window_bounds = array<i64: 16, 128>}]} {
    %c0 = arith.constant 0 : index
    %c0_0 = arith.constant 0 : index
    %0 = vector.load %arg3[%c0, %c0_0] : memref<16x128xf32, #tpu.memory_space<vmem>>, vector<16x128xf32>
    %1 = arith.truncf %0 : vector<16x128xf32> to vector<16x128xbf16>
    %c0_1 = arith.constant 0 : index
    %c0_2 = arith.constant 0 : index
    %2 = vector.load %arg4[%c0_1, %c0_2] : memref<128x128xbf16, #tpu.memory_space<vmem>>, vector<128x128xbf16>
    %cst = arith.constant dense<0.000000e+00> : vector<16x128xf32>
    %3 = tpu.matmul %1, %2, %cst {dimension_numbers = #tpu.dot_dimension_numbers<[1], [0], [0], [1], [0, 0, 1, 1], [], []>} : vector<16x128xbf16>, vector<128x128xbf16>, vector<16x128xf32> -> vector<16x128xf32>
    %c0_3 = arith.constant 0 : index
    %c0_4 = arith.constant 0 : index
    %4 = memref.load %arg2[%c0_3, %c0_4] : memref<1x1xf32, #tpu.memory_space<smem>>
    %c0_5 = arith.constant 0 : index
    %c0_6 = arith.constant 0 : index
    %5 = vector.load %arg5[%c0_5, %c0_6] : memref<8x128xf32, #tpu.memory_space<vmem>>, vector<1x128xf32>
    %c1 = arith.constant 1 : index
    %c0_7 = arith.constant 0 : index
    %6 = vector.load %arg5[%c1, %c0_7] : memref<8x128xf32, #tpu.memory_space<vmem>>, vector<1x128xf32>
    %c2 = arith.constant 2 : index
    %c0_8 = arith.constant 0 : index
    %7 = vector.load %arg5[%c2, %c0_8] : memref<8x128xf32, #tpu.memory_space<vmem>>, vector<1x128xf32>
    %c3 = arith.constant 3 : index
    %c0_9 = arith.constant 0 : index
    %8 = vector.load %arg5[%c3, %c0_9] : memref<8x128xf32, #tpu.memory_space<vmem>>, vector<1x128xf32>
    %9 = vector.broadcast %4 : f32 to vector<1x128xf32>
    %10 = arith.mulf %9, %6 : vector<1x128xf32>
    %11 = arith.addf %10, %7 : vector<1x128xf32>
    %12 = arith.negf %11 : vector<1x128xf32>
    %13 = math.exp %12 : vector<1x128xf32>
    %cst_10 = arith.constant 1.000000e+00 : f32
    %14 = vector.broadcast %cst_10 : f32 to vector<1x128xf32>
    %15 = arith.addf %14, %13 : vector<1x128xf32>
    %16 = arith.divf %14, %15 : vector<1x128xf32>
    %17 = vector.broadcast %5 : vector<1x128xf32> to vector<16x128xf32>
    %18 = arith.addf %3, %17 : vector<16x128xf32>
    %19 = vector.broadcast %16 : vector<1x128xf32> to vector<16x128xf32>
    %20 = arith.mulf %18, %19 : vector<16x128xf32>
    %21 = vector.broadcast %4 : f32 to vector<1x128xf32>
    %22 = arith.mulf %21, %8 : vector<1x128xf32>
    %23 = vector.broadcast %22 : vector<1x128xf32> to vector<16x128xf32>
    %24 = arith.addf %20, %23 : vector<16x128xf32>
    %c0_11 = arith.constant 0 : index
    %c0_12 = arith.constant 0 : index
    %25 = vector.load %arg6[%c0_11, %c0_12] : memref<16x128xf32, #tpu.memory_space<vmem>>, vector<16x128xf32>
    tpu.vector_store %arg6[%c0_11, %c0_12], %24 {strides = array<i32>} : memref<16x128xf32, #tpu.memory_space<vmem>>, vector<16x128xf32>,
    return
  }
  func.func @transform_0(%arg0: i32, %arg1: i32) -> (i32, i32) {
    %c0_i32 = arith.constant 0 : i32
    %c0_i32_0 = arith.constant 0 : i32
    %c0_i32_1 = arith.constant 0 : i32
    return %c0_i32, %c0_i32_0 : i32, i32
  }
  func.func @transform_1(%arg0: i32, %arg1: i32) -> (i32, i32) {
    %c0_i32 = arith.constant 0 : i32
    %c0_i32_0 = arith.constant 0 : i32
    return %arg0, %c0_i32 : i32, i32
  }
  func.func @transform_2(%arg0: i32, %arg1: i32) -> (i32, i32) {
    %c0_i32 = arith.constant 0 : i32
    %c0_i32_0 = arith.constant 0 : i32
    return %c0_i32, %arg1 : i32, i32
  }
  func.func @transform_3(%arg0: i32, %arg1: i32) -> (i32, i32) {
    %c0_i32 = arith.constant 0 : i32
    %c0_i32_0 = arith.constant 0 : i32
    return %c0_i32, %arg1 : i32, i32
  }
  func.func @transform_4(%arg0: i32, %arg1: i32) -> (i32, i32) {
    %c0_i32 = arith.constant 0 : i32
    return %arg0, %arg1 : i32, i32
  }
}

</mosaic_0001>

<bundles_post_ra>
// kernel: tpu_custom_call.1
= control target key start
LH: loop header
LB: loop body
LE: loop exit
PB: predicated region body
PF: predicated region fallthrough
CT: control target
= control target key end

     0   :  { %10 = vsyncpa [#allocation4], 0  ;;  %s430_s0 = inlined_call_operand.<no memory space> [shape: f32[1,1], index: 0, kind: input, shape index: {}]   ;;  %s431_s1 = inlined_call_operand.hbm [shape: f32[16,128], index: 1, kind: input, shape index: {}]   ;;  %s432_s2 = inlined_call_operand.hbm [shape: bf16[128,128], index: 2, kind: input, shape index: {}]   ;;  %s433_s3 = inlined_call_operand.vmem [shape: f32[8,128], index: 3, kind: input, shape index: {}]   ;;  %s434_s4 = inlined_call_operand.hbm [shape: f32[16,128], index: 4, kind: output, shape index: {}]  }
   0x1   :  { %11 = vsyncpa [#allocation7], 0 }
   0x2   :  { %12 = vsyncpa [#allocation5], 0  ;;  %s339_s15 = smov [#allocation3]   ;;  %s267_s19 = scalar_lea.hbm %s431_s1, 256 }
   0x3   :  { %s20_s16 = sshll.u32 %s339_s15, 4  ;;  %p268_p0 = scmp.ne.s32.totalorder %s431_s1, %s267_s19  ;;  %s21_s16 = int_to_ptr.vmem [resolvable:$true] %s20_s16 }
   0x4   :  { %p271_p1 = scmp.lt.u32.totalorder %s267_s19, %s431_s1 }
   0x6   :  { %p273_p2 = pnand %p271_p1, %p268_p0 }
   0x8   :  { %276 = shalt.err (!%p273_p2)
}
   0x9   :  { %s277_s24 = scalar_lea.vmem %s21_s16, 256  ;;  %p282_p4 = scmp.lt.s32.totalorder %s21_s16, %s21_s16 }
   0xa   :  { %p278_p3 = scmp.ne.s32.totalorder %s21_s16, %s277_s24  ;;  %p283_p5 = scmp.lt.s32.totalorder %s277_s24, %s277_s24 }
   0xc   :  { %p284_p6 = por %p283_p5, %p282_p4 }
   0xe   :  { %p285_p7 = pnand %p284_p6, %p278_p3 }
  0x10   :  { %288 = shalt.err (!%p285_p7)
}
  0x11   :  { %s340_s25 = smov 128   ;;  %s341_s26 = smov 8  }
  0x12   :  { %26 = dma.hbm_to_vmem [thread:$0]  %s431_s1, 256, %s21_s16, [#allocation4], %s340_s25, %s340_s25, %s341_s26  }
  0x13   :  { %s342_s29 = smov [#allocation6]   ;;  %s289_s7 = scalar_lea.hbm %s432_s2, 1024 }
  0x14   :  { %s32_s30 = sshll.u32 %s342_s29, 4  ;;  %p290_p8 = scmp.ne.s32.totalorder %s432_s2, %s289_s7  ;;  %s33_s30 = int_to_ptr.vmem [resolvable:$true] %s32_s30 }
  0x15   :  { %p293_p9 = scmp.lt.u32.totalorder %s289_s7, %s432_s2 }
  0x17   :  { %p295_p10 = pnand %p293_p9, %p290_p8 }
  0x19   :  { %298 = shalt.err (!%p295_p10)
}
  0x1a   :  { %s299_s12 = scalar_lea.vmem %s33_s30, 1024  ;;  %p304_p12 = scmp.lt.s32.totalorder %s33_s30, %s33_s30 }
  0x1b   :  { %p300_p11 = scmp.ne.s32.totalorder %s33_s30, %s299_s12  ;;  %p305_p13 = scmp.lt.s32.totalorder %s299_s12, %s299_s12 }
  0x1d   :  { %p306_p0 = por %p305_p13, %p304_p12 }
  0x1f   :  { %p307_p1 = pnand %p306_p0, %p300_p11 }
  0x21   :  { %310 = shalt.err (!%p307_p1)
}
  0x22   :  { %s343_s1 = smov 64   ;;  %s344_s13 = smov 4  }
  0x23   :  { %38 = dma.hbm_to_vmem [thread:$0]  %s432_s2, 1024, %s33_s30, [#allocation7], %s343_s1, %s343_s1, %s344_s13  }
  0x24   :  { %333 = dma.done.wait [#allocation4], 256  }
  0x25   :  { %334 = vsyncadd [#allocation4], 4294967040 }
  0x26   :  { %335 = dma.done.wait [#allocation7], 1024  }
  0x27   :  { %336 = vsyncadd [#allocation7], 4294966272  ;;  %v345_v0 = vmov 0.0   ;;  %vm346_vm0 = vmmov 0   ;;  %v255_v1 = vld [vmem:[#allocation6] sm:$0xff]   ;;  %v256_v2 = vld [vmem:[#allocation6 + $0x8] sm:$0xff]   ;;  %v72_v13 = vstv %s430_s0  ;;  %v174_v20 = vlaneseq }
  0x28   :  { %226 = vmatprep.subr.bf16.mxu0 %v345_v0  ;;  %242 = vmatprep.mubr.msk.bf16.mxu0 %vm346_vm0, %v345_v0  ;;  %v257_v3 = vld [vmem:[#allocation6 + $0x10] sm:$0xff]   ;;  %v258_v4 = vld [vmem:[#allocation6 + $0x18] sm:$0xff]   ;;  %v259_v5 = vld [vmem:[#allocation6 + $0x20] sm:$0xff]   ;;  %s347_s24 = smov [#allocation8]  }
  0x29   :  { %227 = vmatpush3.bf16.msra.mxu0 %v255_v1  ;;  %v260_v6 = vld [vmem:[#allocation6 + $0x28] sm:$0xff]   ;;  %v261_v7 = vld [vmem:[#allocation6 + $0x30] sm:$0xff]   ;;  %v262_v8 = vld [vmem:[#allocation6 + $0x38] sm:$0xff]   ;;  %v175_v21 = vshrl.u32 %v174_v20, 7  ;;  %s194_s27 = sshll.u32 %s347_s24, 4  ;;  %s195_s27 = int_to_ptr.vmem [resolvable:$true] %s194_s27 }
  0x2a   :  { %228 = vmatprep.subr.bf16.mxu0 %v345_v0  ;;  %v48_v9 = vld [vmem:[#allocation3] sm:$0xff]  ;;  %v49_v10 = vld [vmem:[#allocation3 + $0x8] sm:$0xff]  ;;  %s311_s28 = scalar_lea.vmem %s195_s27, 256  ;;  %p316_p3 = scmp.lt.s32.totalorder %s195_s27, %s195_s27 }
  0x2b   :  { %v50_v11 = vpack.c.bf16 %v49_v10, %v48_v9  ;;  %v69_v12 = vld [vmem:[%s433_s3 + $0x1] sm:$0x1]  ;;  %v70_v15 = vld [vmem:[%s433_s3 + $0x2] sm:$0x1]  ;;  %v71_v22 = vld [vmem:[%s433_s3 + $0x3] sm:$0x1]  ;;  %p312_p2 = scmp.ne.s32.totalorder %s195_s27, %s311_s28  ;;  %p317_p4 = scmp.lt.s32.totalorder %s311_s28, %s311_s28 }
  0x2c   :  { %v73_v14 = vmul.f32 %v72_v13, %v69_v12  ;;  %v176_v23 = vsub.s32 0, %v175_v21  ;;  %v180_v25 = vmul.f32 %v72_v13, %v71_v22  ;;  %v208_v26 = vld [vmem:[%s433_s3] ss:$0 sm:$0xff] }
  0x2d   :  { %229 = vmatpush3.bf16.msra.mxu0 %v256_v2  ;;  %p318_p5 = por %p317_p4, %p316_p3 }
  0x2e   :  { %230 = vmatprep.subr.bf16.mxu0 %v345_v0  ;;  %v74_v16 = vadd.f32 %v73_v14, %v70_v15  ;;  %v184_v30 = vrot.slane %v180_v25, %v176_v23 }
  0x2f   :  { %p319_p6 = pnand %p318_p5, %p312_p2 }
  0x30   :  { %v207_v17 = vmul.f32 -1.442695, %v74_v16 }
  0x31   :  { %231 = vmatpush3.bf16.msra.mxu0 %v257_v3 }
  0x32   :  { %232 = vmatprep.subr.bf16.mxu0 %v345_v0  ;;  %263 = vpow2.f32 %v207_v17 }
  0x35   :  { %233 = vmatpush3.bf16.msra.mxu0 %v258_v4 }
  0x36   :  { %234 = vmatprep.subr.bf16.mxu0 %v345_v0 }
  0x39   :  { %235 = vmatpush3.bf16.msra.mxu0 %v259_v5 }
  0x3a   :  { %236 = vmatprep.subr.bf16.mxu0 %v345_v0 }
  0x3c   :  { %v264_v18 = vpop.eup %263 }
  0x3d   :  { %237 = vmatpush3.bf16.msra.mxu0 %v260_v6  ;;  %v78_v19 = vadd.f32 1.0, %v264_v18 }
  0x3e   :  { %238 = vmatprep.subr.bf16.mxu0 %v345_v0 }
  0x3f   :  { %265 = vrcp.f32 %v78_v19 }
  0x41   :  { %239 = vmatpush3.bf16.msra.mxu0 %v261_v7 }
  0x42   :  { %240 = vmatprep.subr.bf16.mxu0 %v345_v0 }
  0x45   :  { %241 = vmatpush3.bf16.msra.mxu0 %v262_v8 }
  0x48   :  { %243 = vmatmul.mubr.bf16.vlgmr.msra.gmra.mrb[0].mxu0 %v50_v11 }
  0x49   :  { %v266_v24 = vpop.eup %265 }
  0x4a   :  { %v177_v27 = vrot.slane %v266_v24, %v176_v23 }
 0x11b   :  { %v167_v28 = vpop.f32.mrb[0].mxu0 }
 0x11c   :  { %v168_v29 = vadd.f32 %v208_v26, %v167_v28  ;;  %v244_v31 = vpop.f32.mrb[1].mxu0 }
 0x11d   :  { %v170_v32 = vpop.f32.mrb[2].mxu0 }
 0x11e   :  { %v178_v33 = vmul.f32 %v177_v27, %v168_v29  ;;  %v171_v34 = vadd.f32 %v208_v26, %v170_v32  ;;  %v245_v35 = vpop.f32.mrb[3].mxu0 }
 0x120   :  { %v185_v36 = vadd.f32 %v184_v30, %v178_v33  ;;  %v179_v37 = vmul.f32 %v177_v27, %v171_v34 }
 0x122   :  { %187 = vst [vmem:[#allocation8] sm:$0xff] %v185_v36  ;;  %v186_v38 = vadd.f32 %v184_v30, %v179_v37 }
 0x124   :  { %188 = vst [vmem:[#allocation8 + $0x8] sm:$0xff] %v186_v38 }
 0x125   :  { %322 = shalt.err (!%p319_p6)
}
 0x126   :  { %s323_s30 = scalar_lea.hbm %s434_s4, 256 }
 0x127   :  { %p324_p7 = scmp.ne.s32.totalorder %s434_s4, %s323_s30  ;;  %p327_p8 = scmp.lt.u32.totalorder %s323_s30, %s434_s4 }
 0x129   :  { %p329_p9 = pnand %p327_p8, %p324_p7 }
 0x12b   :  { %332 = shalt.err (!%p329_p9)
}
 0x12c   :  { %200 = dma.vmem_to_hbm [thread:$0]  %s195_s27, 256, %s434_s4, [#allocation5], %s340_s25, %s340_s25, %s341_s26  }
 0x12d   :  { %337 = dma.done.wait [#allocation5], 256  }
 0x12e   :  { %338 = vsyncadd [#allocation5], 4294967040 }
 0x12f   :  { %204 = vsyncpa [#allocation4], 1 }
 0x130   :  { %205 = vsyncpa [#allocation7], 1 }
 0x131   :  { %206 = vsyncpa [#allocation5], 1 }

</bundles_post_ra>
